<compile_context>
chip_gen: v6e
topology: v6e:2x2x1
jax: 0.10.0
libtpu: 0.0.40
codegen_flags: <defaults>
</compile_context>

<pallas_src>
import functools
import math

import jax
import jax.numpy as jnp
from jax.experimental import pallas as pl
from jax.experimental.pallas import tpu as pltpu

LANE = 128
NUM_STATS = 6           # six streaming statistics, each held as an (8, 128) slab
MIN_TILE_R = 256
MAX_TILE_R = 2048       # 2048 x 128 f32 = 1 MiB per input block


def _round_up(x, m):
    return ((x + m - 1) // m) * m


def _choose_tiling(r, batch):
    """Pick (tile_r, n_chunks, num_k, r_pad) for an r-row (x128 lanes) stream.

    tile_r is a multiple of 16 (valid for f32/bf16 packing and the in-kernel
    (tile_r//8, 8, 128) fold).  Prefers an exact divisor of r (no jnp.pad
    copy).  n_chunks > 1 splits the R axis into parallel chunks so both v7x
    TensorCores are busy when the batch alone cannot do it.
    """
    if r <= MAX_TILE_R:
        tile_r = _round_up(max(r, 8), 16)
        return tile_r, 1, 1, tile_r

    preferred_chunks = 2 if batch == 1 else 1
    chunk_options = [preferred_chunks, 1] if preferred_chunks != 1 else [1]
    for n_chunks in chunk_options:
        for cand in range(MAX_TILE_R, MIN_TILE_R - 1, -16):
            if r % (cand * n_chunks) == 0:
                return cand, n_chunks, r // (cand * n_chunks), r

    # No clean divisor in range: fall back to max tile + zero padding.
    n_chunks = preferred_chunks
    tile_r = MAX_TILE_R
    r_pad = _round_up(r, tile_r * n_chunks)
    return tile_r, n_chunks, r_pad // (tile_r * n_chunks), r_pad


def _stats_kernel(pred_ref, act_ref, out_ref, *, mask_threshold):
    """Accumulate per-sample streaming statistics over R-tiles.

    Output block (1, 1, 48, 128); rows [8j, 8j+8) hold the (8, 128) partial of
    statistic j (sublane+lane summed in the wrapper):
      0: sum over manipulated pixels of min(-log(p), 100)       (BCE, target=1)
      1: count of manipulated pixels
      2: sum over ALL pixels of min(-log(sel), 100), sel = p if manip else 1-p
      3: sum(p * a)   (dice intersection, raw actual map)
      4: sum(p)
      5: sum(a)
    """
    @pl.when(pl.program_id(2) == 0)
    def _():
        out_ref[...] = jnp.zeros_like(out_ref)

    # Stream in native dtype; upcast per-vreg (no-op for f32 inputs).
    p = pred_ref[0].astype(jnp.float32)   # (tile_r, 128)
    a = act_ref[0].astype(jnp.float32)    # (tile_r, 128)

    is_manip = a > mask_threshold
    # One fused transcendental per element (EUP slot).
    sel = jnp.where(is_manip, p, 1.0 - p)
    # nn.BCELoss clamps log outputs at -100 => per-element loss clamped at 100.
    neg_log = jnp.minimum(-jnp.log(sel), 100.0)
    manip_f = is_manip.astype(jnp.float32)

    def fold(x):
        # (tile_r, 128) -> (8, 128): vreg-by-vreg VALU adds, no XLU reduction.
        return jnp.sum(x.reshape(-1, 8, LANE), axis=0)

    stacked = jnp.concatenate(
        [
            fold(jnp.where(is_manip, neg_log, 0.0)),   # 0: manipulated BCE sum
            fold(manip_f),                             # 1: manipulated count
            fold(neg_log),                             # 2: total BCE sum
            fold(p * a),                               # 3: dice intersection
            fold(p),                                   # 4: sum(pred)
            fold(a),                                   # 5: sum(actual)
        ],
        axis=0,
    )  # (48, 128)

    # Single unmasked full-vreg accumulate into the resident output block.
    out_ref[0, 0] += stacked


def class_aware_bce_dice_loss(
    predicted_map,
    predicted_class,
    actual_map,
    actual_class,
    *,
    detection_loss_weight=0.2,
    manipulated_bce_loss_weight=0.15,
    authentic_bce_loss_weight=0.15,
    dice_loss_weight=0.5,
    mask_threshold=0.5,
    dice_smooth=1.0,
):
    assert predicted_map.shape == actual_map.shape
    assert predicted_map.shape[1] == 1, "only the single-channel path is implemented"

    b = predicted_map.shape[0]
    n = math.prod(predicted_map.shape[1:])
    r = -(-n // LANE)

    tile_r, n_chunks, num_k, r_pad = _choose_tiling(r, b)
    n_pad = r_pad * LANE

    def to_tiles(x):
        # Keep floating inputs in their native dtype (f32 or bf16); only
        # non-float ground-truth masks get widened.  Upcast happens per-vreg
        # inside the kernel, not as a full-array HBM copy here.
        if not jnp.issubdtype(x.dtype, jnp.floating):
            x = x.astype(jnp.float32)
        xf = x.reshape(b, n)
        if n_pad != n:  # common map sizes pick a divisor tile and skip this copy
            xf = jnp.pad(xf, ((0, 0), (0, n_pad - n)))
        return xf.reshape(b, r_pad, LANE)

    pred_t = to_tiles(predicted_map)
    act_t = to_tiles(actual_map)

    kernel = functools.partial(_stats_kernel, mask_threshold=float(mask_threshold))
    stats = pl.pallas_call(
        kernel,
        out_shape=jax.ShapeDtypeStruct((n_chunks, b, NUM_STATS * 8, LANE), jnp.float32),
        grid_spec=pltpu.PrefetchScalarGridSpec(
            num_scalar_prefetch=0,
            grid=(n_chunks, b, num_k),
            in_specs=[
                pl.BlockSpec((1, tile_r, LANE), lambda c, i, k: (i, c * num_k + k, 0)),
                pl.BlockSpec((1, tile_r, LANE), lambda c, i, k: (i, c * num_k + k, 0)),
            ],
            # Same output block across the k axis -> resident accumulator.
            out_specs=pl.BlockSpec(
                (1, 1, NUM_STATS * 8, LANE), lambda c, i, k: (c, i, 0, 0)
            ),
        ),
        compiler_params=pltpu.CompilerParams(
            dimension_semantics=("parallel", "parallel", "arbitrary"),
            vmem_limit_bytes=32 * 1024 * 1024,
        ),
    )(pred_t, act_t)

    # Finish the reduction in XLA: (chunks, B, 48, 128) -> (B, 6).
    st = jnp.sum(stats, axis=0).reshape(b, NUM_STATS, 8 * LANE).sum(axis=-1)
    manip_sum = st[:, 0]
    manip_cnt = st[:, 1]
    total_nl = st[:, 2]
    intersection = jnp.sum(st[:, 3])
    sum_pred = jnp.sum(st[:, 4])
    sum_act = jnp.sum(st[:, 5])

    # Padding contributed 0 to every sum; only the authentic count needs care,
    # and it is derived from the true per-sample element count n.
    auth_sum = total_nl - manip_sum
    auth_cnt = jnp.float32(n) - manip_cnt

    # Detection BCE over the tiny per-sample class vector (plain-JAX glue).
    pc = predicted_class.astype(jnp.float32)
    ac = actual_class.astype(jnp.float32)
    log_p = jnp.maximum(jnp.log(pc), -100.0)
    log_1mp = jnp.maximum(jnp.log(1.0 - pc), -100.0)
    det_loss = jnp.mean(-(ac * log_p + (1.0 - ac) * log_1mp), axis=1)  # (B,)

    # Empty-subset terms are skipped (not added), as in the reference's
    # `if ... .nelement() > 0` guards.
    manip_loss = jnp.where(manip_cnt > 0, manip_sum / jnp.maximum(manip_cnt, 1.0), 0.0)
    auth_loss = jnp.where(auth_cnt > 0, auth_sum / jnp.maximum(auth_cnt, 1.0), 0.0)
    per_sample = (
        det_loss * detection_loss_weight
        + manip_loss * manipulated_bce_loss_weight
        + auth_loss * authentic_bce_loss_weight
    )
    bce_loss = jnp.mean(per_sample)

    # Dice over the whole batch (reference flattens the full tensors).
    dice = (2.0 * intersection + dice_smooth) / (sum_pred + sum_act + dice_smooth)
    dice_loss = (1.0 - dice) * dice_loss_weight
    return dice_loss + bce_loss


if __name__ == "__main__":
    key = jax.random.PRNGKey(0)
    k1, k2, k3, k4 = jax.random.split(key, 4)

    B, C, H, W = 2, 1, 16, 16
    N_CLS = 1

    # Probabilities in (0, 1): this module uses nn.BCELoss (not with-logits).
    predicted_map = jax.random.uniform(
        k1, (B, C, H, W), jnp.float32, minval=1e-4, maxval=1.0 - 1e-4
    )
    # Binary ground-truth localization mask.
    actual_map = (jax.random.uniform(k2, (B, C, H, W)) > 0.5).astype(jnp.float32)
    predicted_class = jax.random.uniform(
        k3, (B, N_CLS), jnp.float32, minval=1e-4, maxval=1.0 - 1e-4
    )
    actual_class = (jax.random.uniform(k4, (B, N_CLS)) > 0.5).astype(jnp.float32)

    loss = class_aware_bce_dice_loss(
        predicted_map, predicted_class, actual_map, actual_class
    )
    jax.block_until_ready(loss)
    print("KERNEL_OK")
</pallas_src>

<mosaic_0001>
module attributes {stable_mosaic.version = 11 : i64} {
  func.func @_stats_kernel(%arg0: i32, %arg1: i32, %arg2: i32, %arg3: memref<1x16x128xf32, #tpu.memory_space<vmem>>, %arg4: memref<1x16x128xf32, #tpu.memory_space<vmem>>, %arg5: memref<1x1x48x128xf32, #tpu.memory_space<vmem>>) attributes {dimension_semantics = [#tpu.dimension_semantics<parallel>, #tpu.dimension_semantics<parallel>, #tpu.dimension_semantics<arbitrary>], iteration_bounds = array<i64: 1, 2, 1>, scalar_prefetch = 0 : i64, scratch_operands = 0 : i64, tpu.core_type = #tpu.core_type<tc>, window_params = [{transform_indices = @transform_0, window_bounds = array<i64: 1, 16, 128>}, {transform_indices = @transform_1, window_bounds = array<i64: 1, 16, 128>}, {transform_indices = @transform_2, window_bounds = array<i64: 1, 1, 48, 128>}]} {
    %c0_i32 = arith.constant 0 : i32
    %0 = arith.cmpi eq, %arg2, %c0_i32 : i32
    %1 = arith.extui %0 : i1 to i32
    %c0_i32_0 = arith.constant 0 : i32
    %2 = arith.cmpi ne, %1, %c0_i32_0 : i32
    scf.if %2 {
      %cst_24 = arith.constant 0.000000e+00 : f32
      %41 = vector.broadcast %cst_24 : f32 to vector<1x1x48x128xf32>
      %c0_25 = arith.constant 0 : index
      %c0_26 = arith.constant 0 : index
      %c0_27 = arith.constant 0 : index
      %c0_28 = arith.constant 0 : index
      %42 = vector.load %arg5[%c0_25, %c0_26, %c0_27, %c0_28] : memref<1x1x48x128xf32, #tpu.memory_space<vmem>>, vector<1x1x48x128xf32>
      tpu.vector_store %arg5[%c0_25, %c0_26, %c0_27, %c0_28], %41 {strides = array<i32>} : memref<1x1x48x128xf32, #tpu.memory_space<vmem>>, vector<1x1x48x128xf32>,
    } else {
    }
    %c0 = arith.constant 0 : index
    %c0_1 = arith.constant 0 : index
    %c0_2 = arith.constant 0 : index
    %3 = vector.load %arg3[%c0, %c0_1, %c0_2] : memref<1x16x128xf32, #tpu.memory_space<vmem>>, vector<1x16x128xf32>
    %4 = vector.shape_cast %3 : vector<1x16x128xf32> to vector<16x128xf32>
    %c0_3 = arith.constant 0 : index
    %c0_4 = arith.constant 0 : index
    %c0_5 = arith.constant 0 : index
    %5 = vector.load %arg4[%c0_3, %c0_4, %c0_5] : memref<1x16x128xf32, #tpu.memory_space<vmem>>, vector<1x16x128xf32>
    %6 = vector.shape_cast %5 : vector<1x16x128xf32> to vector<16x128xf32>
    %cst = arith.constant 5.000000e-01 : f32
    %7 = vector.broadcast %cst : f32 to vector<16x128xf32>
    %8 = arith.cmpf ogt, %6, %7 : vector<16x128xf32>
    %cst_6 = arith.constant 1.000000e+00 : f32
    %9 = vector.broadcast %cst_6 : f32 to vector<16x128xf32>
    %10 = arith.subf %9, %4 : vector<16x128xf32>
    %11 = arith.select %8, %4, %10 : vector<16x128xi1>, vector<16x128xf32>
    %12 = math.log %11 : vector<16x128xf32>
    %cst_7 = arith.constant 0.000000e+00 : f32
    %13 = vector.broadcast %cst_7 : f32 to vector<16x128xf32>
    %14 = arith.subf %13, %12 : vector<16x128xf32>
    %cst_8 = arith.constant 1.000000e+02 : f32
    %15 = vector.broadcast %cst_8 : f32 to vector<16x128xf32>
    %16 = arith.minimumf %14, %15 : vector<16x128xf32>
    %17 = arith.extui %8 : vector<16x128xi1> to vector<16x128xi32>
    %18 = arith.sitofp %17 : vector<16x128xi32> to vector<16x128xf32>
    %cst_9 = arith.constant 0.000000e+00 : f32
    %19 = vector.broadcast %cst_9 : f32 to vector<16x128xf32>
    %20 = arith.select %8, %16, %19 : vector<16x128xi1>, vector<16x128xf32>
    %21 = vector.shape_cast %20 : vector<16x128xf32> to vector<2x8x128xf32>
    %cst_10 = arith.constant dense<0.000000e+00> : vector<8x128xf32>
    %22 = vector.multi_reduction <add>, %21, %cst_10 [0] : vector<2x8x128xf32> to vector<8x128xf32>
    %23 = vector.shape_cast %18 : vector<16x128xf32> to vector<2x8x128xf32>
    %cst_11 = arith.constant dense<0.000000e+00> : vector<8x128xf32>
    %24 = vector.multi_reduction <add>, %23, %cst_11 [0] : vector<2x8x128xf32> to vector<8x128xf32>
    %25 = vector.shape_cast %16 : vector<16x128xf32> to vector<2x8x128xf32>
    %cst_12 = arith.constant dense<0.000000e+00> : vector<8x128xf32>
    %26 = vector.multi_reduction <add>, %25, %cst_12 [0] : vector<2x8x128xf32> to vector<8x128xf32>
    %27 = arith.mulf %4, %6 : vector<16x128xf32>
    %28 = vector.shape_cast %27 : vector<16x128xf32> to vector<2x8x128xf32>
    %cst_13 = arith.constant dense<0.000000e+00> : vector<8x128xf32>
    %29 = vector.multi_reduction <add>, %28, %cst_13 [0] : vector<2x8x128xf32> to vector<8x128xf32>
    %30 = vector.shape_cast %4 : vector<16x128xf32> to vector<2x8x128xf32>
    %cst_14 = arith.constant dense<0.000000e+00> : vector<8x128xf32>
    %31 = vector.multi_reduction <add>, %30, %cst_14 [0] : vector<2x8x128xf32> to vector<8x128xf32>
    %32 = vector.shape_cast %6 : vector<16x128xf32> to vector<2x8x128xf32>
    %cst_15 = arith.constant dense<0.000000e+00> : vector<8x128xf32>
    %33 = vector.multi_reduction <add>, %32, %cst_15 [0] : vector<2x8x128xf32> to vector<8x128xf32>
    %34 = tpu.concatenate %22, %24, %26, %29, %31, %33 in 0 : vector<8x128xf32>, vector<8x128xf32>, vector<8x128xf32>, vector<8x128xf32>, vector<8x128xf32>, vector<8x128xf32> -> vector<48x128xf32>
    %c0_16 = arith.constant 0 : index
    %c0_17 = arith.constant 0 : index
    %c0_18 = arith.constant 0 : index
    %c0_19 = arith.constant 0 : index
    %35 = vector.load %arg5[%c0_16, %c0_17, %c0_18, %c0_19] : memref<1x1x48x128xf32, #tpu.memory_space<vmem>>, vector<1x1x48x128xf32>
    %36 = vector.shape_cast %35 : vector<1x1x48x128xf32> to vector<48x128xf32>
    %37 = arith.addf %36, %34 : vector<48x128xf32>
    %c0_20 = arith.constant 0 : index
    %c0_21 = arith.constant 0 : index
    %c0_22 = arith.constant 0 : index
    %c0_23 = arith.constant 0 : index
    %38 = vector.load %arg5[%c0_20, %c0_21, %c0_22, %c0_23] : memref<1x1x48x128xf32, #tpu.memory_space<vmem>>, vector<1x1x48x128xf32>
    %39 = vector.shape_cast %38 : vector<1x1x48x128xf32> to vector<48x128xf32>
    %40 = vector.shape_cast %37 : vector<48x128xf32> to vector<1x1x48x128xf32>
    tpu.vector_store %arg5[%c0_20, %c0_21, %c0_22, %c0_23], %40 {strides = array<i32>} : memref<1x1x48x128xf32, #tpu.memory_space<vmem>>, vector<1x1x48x128xf32>,
    return
  }
  func.func @transform_0(%arg0: i32, %arg1: i32, %arg2: i32) -> (i32, i32, i32) {
    %c1_i32 = arith.constant 1 : i32
    %0 = arith.muli %arg0, %c1_i32 : i32
    %1 = arith.addi %0, %arg2 : i32
    %c0_i32 = arith.constant 0 : i32
    %c0_i32_0 = arith.constant 0 : i32
    return %arg1, %1, %c0_i32 : i32, i32, i32
  }
  func.func @transform_1(%arg0: i32, %arg1: i32, %arg2: i32) -> (i32, i32, i32) {
    %c1_i32 = arith.constant 1 : i32
    %0 = arith.muli %arg0, %c1_i32 : i32
    %1 = arith.addi %0, %arg2 : i32
    %c0_i32 = arith.constant 0 : i32
    %c0_i32_0 = arith.constant 0 : i32
    return %arg1, %1, %c0_i32 : i32, i32, i32
  }
  func.func @transform_2(%arg0: i32, %arg1: i32, %arg2: i32) -> (i32, i32, i32, i32) {
    %c0_i32 = arith.constant 0 : i32
    %c0_i32_0 = arith.constant 0 : i32
    %c0_i32_1 = arith.constant 0 : i32
    return %arg0, %arg1, %c0_i32, %c0_i32_0 : i32, i32, i32, i32
  }
}

</mosaic_0001>

<bundles_post_ra>
// kernel: tpu_custom_call.1
= control target key start
LH: loop header
LB: loop body
LE: loop exit
PB: predicated region body
PF: predicated region fallthrough
CT: control target
= control target key end

     0   :  { %7 = vsyncpa [#allocation3], 0  ;;  %s886_s0 = inlined_call_operand.hbm [shape: f32[2,16,128], index: 0, kind: input, shape index: {}]   ;;  %s887_s1 = inlined_call_operand.hbm [shape: f32[2,16,128], index: 1, kind: input, shape index: {}]   ;;  %s888_s2 = inlined_call_operand.hbm [shape: f32[1,2,48,128], index: 2, kind: output, shape index: {}]  }
   0x1   :  { %9 = vsyncpa [#allocation3 + $0x1], 0 }
   0x2   :  { %10 = vsyncpa [#allocation6], 0 }
   0x3   :  { %12 = vsyncpa [#allocation6 + $0x1], 0 }
   0x4   :  { %13 = vsyncpa [#allocation4], 0 }
   0x5   :  { %15 = vsyncpa [#allocation4 + $0x1], 0  ;;  %s698_s9 = smov 0   ;;  %s700_s10 = smov 0  }
   0x6   :  { %s702_s11 = smov 0   ;;  %s704_s12 = smov 0  }
   0x7   :  { %s706_s13 = smov 0   ;;  %s708_s14 = smov 0  }
   0x8 LB: > { %s435_s15 = sadd.s32 4294967295, %s673_s14   ;;  %s436_s16 = sadd.s32 4294967294, %s673_s14   ;;  %s673_s14 = sphi %s708_s14, %s21_s14   ;;  %s669_s13 = sphi %s706_s13, %s899_s13   ;;  %s665_s12 = sphi %s704_s12, %s898_s12   ;;  %s661_s11 = sphi %s702_s11, %s897_s11   ;;  %s657_s10 = sphi %s700_s10, %s896_s10   ;;  %s653_s9 = sphi %s698_s9, %s895_s9  }
   0x9   : > { %s36_s17 = sadd.s32 1, %s669_s13  ;;  %s51_s18 = sadd.s32 1, %s661_s11 }
   0xa   : > { %p38_p0 = scmp.ge.s32.totalorder %s36_s17, 2  ;;  %p58_p1 = scmp.ne.s32.totalorder %s661_s11, %s657_s10 }
   0xb   : > { %p59_p2 = scmp.eq.s32.totalorder %s673_s14, 0  ;;  %p64_p3 = scmp.ne.s32.totalorder %s657_s10, %s653_s9 }
   0xc   : > { %s901_s17 = smov (%p38_p0, %s36_s17), 0  ;;  %p65_p5 = scmp.eq.s32.totalorder %s435_s15, 0 }
   0xd   : > { %p739_p4 = por %p59_p2, %p58_p1  ;;  %s46_s20 = ssub.s32 %s669_s13, %s901_s17 }
   0xe   : > { %p120_p6 = scmp.eq.s32.totalorder %s435_s15, 1  ;;  %p49_p7 = scmp.eq.s32.totalorder %s46_s20, 0 }
   0xf   : > { %p745_p8 = por %p65_p5, %p64_p3  ;;  %p126_p10 = scmp.eq.s32.totalorder %s436_s16, 1 }
  0x10   : > { %p749_p9 = por %p120_p6, %p58_p1  ;;  %p438_p12 = scmp.ge.s32.totalorder %s673_s14, 2 }
  0x11   : > { %s754_s23 = scalar_select %p49_p7, %s661_s11, %s51_s18  }
  0x12   : > { %p756_p11 = por %p126_p10, %p64_p3  ;;  %p474_p13 = scmp.lt.s32.totalorder %s673_s14, 2 }
  0x13   : > { %s763_s25 = sand.u32 1, %s661_s11   ;;  %s453_s27 = sshll.u32 %s669_s13, 8 }
  0x14   : > { %s439_s26 = sshll.u32 %s763_s25, 4  ;;  %s159_s30 = scalar_lea.hbm %s886_s0, %s453_s27 }
  0x15   : > { %s150_s3 = scalar_lea.vmem [#allocation2], %s439_s26  ;;  %p776_p0 = pnand %p474_p13, %p739_p4 }
  0x16   : > { %s160_s4 = sshll.u32 %s150_s3, 4  ;;  %p445_p1 = scmp.ge.s32.totalorder %s673_s14, 1  ;;  %s161_s4 = int_to_ptr.vmem [resolvable:$true] %s160_s4 }
  0x17   : > { %s147_s6 = scalar_lea.sflag [#allocation3], %s763_s25  ;;  %p535_p2 = pneg %p776_p0 }
  0x18   : > { %s546_s7 = scalar_lea.vmem %s161_s4, 256  ;;  %s675_s8 = smov [#allocation2]  }
  0x19   : > { %p547_p3 = scmp.ne.s32.totalorder %s161_s4, %s546_s7  ;;  %s551_s15 = sshll.u32 %s675_s8, 4  ;;  %s552_s15 = int_to_ptr.vmem [resolvable:$false] %s551_s15 }
  0x1a   : > { %s553_s16 = scalar_lea.vmem %s552_s15, 512  ;;  %p554_p4 = scmp.lt.s32.totalorder %s161_s4, %s552_s15 }
  0x1b   : > { %p549_p5 = pnand %p547_p3, %p535_p2  ;;  %p555_p7 = scmp.lt.s32.totalorder %s553_s16, %s546_s7 }
  0x1d   : > { %p550_p6 = pneg %p549_p5  ;;  %p556_p10 = por %p555_p7, %p554_p4 }
  0x1f   : > { %p557_p13 = pnand %p556_p10, %p550_p6 }
  0x21   : > { %560 = shalt.err (!%p557_p13)
}
  0x22   : > { %s676_s18 = smov 128   ;;  %s677_s19 = smov 8  }
  0x23   : > { %466 = dma.hbm_to_vmem [thread:$0]  (!%p776_p0), %s159_s30, 256, %s161_s4, %s147_s6, %s676_s18, %s676_s18, %s677_s19  }
  0x24   : > { %p192_p3 = scmp.lt.s32.totalorder %s673_s14, 3  ;;  %s183_s29 = scalar_lea.hbm %s887_s1, %s453_s27 }
  0x25   : > { %s174_s7 = scalar_lea.vmem [#allocation5], %s439_s26  ;;  %s171_s15 = scalar_lea.sflag [#allocation6], %s763_s25 }
  0x26   : > { %p797_p5 = pnand %p445_p1, %p192_p3  ;;  %s184_s8 = sshll.u32 %s174_s7, 4  ;;  %s185_s8 = int_to_ptr.vmem [resolvable:$true] %s184_s8 }
  0x27   : > { %s574_s16 = scalar_lea.vmem %s185_s8, 256  ;;  %s678_s30 = smov [#allocation5]  }
  0x28   : > { %p575_p6 = scmp.ne.s32.totalorder %s185_s8, %s574_s16  ;;  %s579_s4 = sshll.u32 %s678_s30, 4  ;;  %s580_s4 = int_to_ptr.vmem [resolvable:$false] %s579_s4 }
  0x29   : > { %s581_s27 = scalar_lea.vmem %s580_s4, 512  ;;  %p582_p10 = scmp.lt.s32.totalorder %s185_s8, %s580_s4 }
  0x2a   : > { %p577_p4 = pnand %p575_p6, %p535_p2  ;;  %p583_p1 = scmp.lt.s32.totalorder %s581_s27, %s574_s16 }
  0x2c   : > { %p578_p7 = pneg %p577_p4  ;;  %p584_p13 = por %p583_p1, %p582_p10 }
  0x2e   : > { %p585_p3 = pnand %p584_p13, %p578_p7 }
  0x30   : > { %588 = shalt.err (!%p585_p3)
}
  0x31   : > { %469 = dma.hbm_to_vmem [thread:$0]  (!%p776_p0), %s183_s29, 256, %s185_s8, %s171_s15, %s676_s18, %s676_s18, %s677_s19  }
  0x32   : > { %196 = sbr.rel (%p797_p5) target bundleno = 100 (0x64), region = 28  ;;  %s812_s25 = sand.u32 (!%p797_p5), 1, %s657_s10  }
  0x33   : > { %s446_s26 = sshll.u32 (!%p797_p5), %s812_s25, 4  ;;  %s199_s6 = scalar_lea.sflag (!%p797_p5), [#allocation3], %s812_s25 }
  0x34   : > { %s202_s20 = scalar_lea.vmem (!%p797_p5), [#allocation2], %s446_s26 }
  0x37   : > { %640 = dma.done.wait (%p745_p8), %s199_s6, 256  }
  0x38   : > { %642 = vsyncadd (%p745_p8), %s199_s6, 4294967040  ;;  %s208_s5 = scalar_lea.sflag [#allocation6], %s812_s25  ;;  %s211_s18 = scalar_lea.vmem [#allocation5], %s446_s26 }
  0x39   : > { %644 = dma.done.wait (%p745_p8), %s208_s5, 256  }
  0x3a   : > { %646 = vsyncadd (%p745_p8), %s208_s5, 4294967040  ;;  %s455_s19 = smul.u32 48, %s812_s25  ;;  %v251_v0 = vld [vmem:[%s202_s20] sm:$0xff]  ;;  %v252_v1 = vld [vmem:[%s202_s20 + $0x8] sm:$0xff]  ;;  %v679_v7 = vmov 0.0   ;;  %s302_s15 = scalar_lea.sflag [#allocation4], %s812_s25 }
  0x3b   : > { %v253_v2 = vld [vmem:[%s211_s18] sm:$0xff]  ;;  %v254_v3 = vld [vmem:[%s211_s18 + $0x8] sm:$0xff]  ;;  %v257_v4 = vsub.f32 1.0, %v251_v0  ;;  %v258_v5 = vsub.f32 1.0, %v252_v1  ;;  %v281_v10 = vadd.f32 %v252_v1, %v251_v0  ;;  %s456_s28 = smul.u32 768, %s665_s12  ;;  %s680_s12 = smov [#allocation7]  }
  0x3c   : > { %vm255_vm0 = vcmp.gt.f32.partialorder %v253_v2, 0.5  ;;  %v278_v6 = vmul.f32 %v253_v2, %v251_v0  ;;  %vm256_vm1 = vcmp.gt.f32.partialorder %v254_v3, 0.5  ;;  %v279_v9 = vmul.f32 %v254_v3, %v252_v1  ;;  %s236_s21 = scalar_lea.vmem [#allocation7], %s455_s19  ;;  %s593_s30 = sshll.u32 %s680_s12, 4  ;;  %s594_s30 = int_to_ptr.vmem [resolvable:$false] %s593_s30 }
  0x3d   : > { %v448_v8 = vsel %vm255_vm0, 1.0, %v679_v7  ;;  %v259_v11 = vsel %vm255_vm0, %v251_v0, %v257_v4  ;;  %v260_v12 = vsel %vm256_vm1, %v252_v1, %v258_v5  ;;  %v449_v13 = vsel %vm256_vm1, 1.0, %v679_v7  ;;  %299 = vst [vmem:[%s236_s21 + $0x20] sm:$0xff] %v281_v10  ;;  %s317_s29 = sshll.u32 %s236_s21, 4  ;;  %s836_s8 = scalar_lea.hbm %s888_s2, %s456_s28  ;;  %s838_s29 = int_to_ptr.vmem [resolvable:$true] %s317_s29 }
  0x3e   : > { %v282_v14 = vadd.f32 %v254_v3, %v253_v2  ;;  %529 = vlog2.f32 %v259_v11  ;;  %v276_v15 = vadd.f32 %v449_v13, %v448_v8  ;;  %v280_v16 = vadd.f32 %v279_v9, %v278_v6  ;;  %s589_s16 = scalar_lea.vmem %s838_s29, 768  ;;  %s595_s4 = scalar_lea.vmem %s594_s30, 1536 }
  0x3f   : > { %531 = vlog2.f32 %v260_v12  ;;  %p590_p8 = scmp.ne.s32.totalorder %s838_s29, %s589_s16  ;;  %p596_p5 = scmp.lt.s32.totalorder %s838_s29, %s594_s30 }
  0x40   : > { %300 = vst [vmem:[%s236_s21 + $0x28] sm:$0xff] %v282_v14  ;;  %296 = vst [vmem:[%s236_s21 + $0x8] sm:$0xff] %v276_v15  ;;  %p597_p6 = scmp.lt.s32.totalorder %s595_s4, %s589_s16 }
  0x41   : > { %298 = vst [vmem:[%s236_s21 + $0x18] sm:$0xff] %v280_v16  ;;  %p591_p0 = pnand %p590_p8, %p749_p9 }
  0x42   : > { %p598_p4 = por %p597_p6, %p596_p5 }
  0x43   : > { %p592_p2 = pneg %p591_p0 }
  0x45   : > { %p599_p7 = pnand %p598_p4, %p592_p2 }
  0x4b   : > { %v530_v17 = vpop.eup %529 }
  0x4c   : > { %v532_v18 = vpop.eup %531  ;;  %v262_v19 = vmul.f32 0.6931472, %v530_v17 }
  0x4d   : > { %v264_v20 = vmul.f32 0.6931472, %v532_v18 }
  0x4e   : > { %v265_v21 = vsub.f32 0.0, %v262_v19 }
  0x4f   : > { %v266_v22 = vsub.f32 0.0, %v264_v20 }
  0x50   : > { %v267_v23 = vmin.f32 %v265_v21, 100.0 }
  0x51   : > { %v268_v24 = vmin.f32 %v266_v22, 100.0 }
  0x52   : > { %v273_v25 = vsel %vm255_vm0, %v267_v23, 0.0 }
  0x53   : > { %v274_v26 = vsel %vm256_vm1, %v268_v24, 0.0  ;;  %v277_v27 = vadd.f32 %v268_v24, %v267_v23 }
  0x54   : > { %v275_v28 = vadd.f32 %v274_v26, %v273_v25 }
  0x55   : > { %297 = vst [vmem:[%s236_s21 + $0x10] sm:$0xff] %v277_v27 }
  0x56   : > { %295 = vst [vmem:[%s236_s21] sm:$0xff] %v275_v28 }
  0x57   : > { %602 = shalt.err (!%p599_p7)
}
  0x58   : > { %s603_s27 = scalar_lea.hbm %s836_s8, 768  ;;  %s607_s20 = scalar_lea.hbm %s888_s2, 1536 }
  0x59   : > { %p604_p10 = scmp.ne.s32.totalorder %s836_s8, %s603_s27  ;;  %p608_p3 = scmp.lt.s32.totalorder %s836_s8, %s888_s2 }
  0x5a   : > { %p609_p8 = scmp.lt.s32.totalorder %s607_s20, %s603_s27 }
  0x5b   : > { %p605_p1 = pnand %p604_p10, %p749_p9 }
  0x5c   : > { %p610_p0 = por %p609_p8, %p608_p3 }
  0x5d   : > { %p606_p13 = pneg %p605_p1 }
  0x5f   : > { %p611_p2 = pnand %p610_p0, %p606_p13 }
  0x61   : > { %614 = shalt.err (!%p611_p2)
}
  0x62   : > { %s681_s19 = smov 128   ;;  %s682_s21 = smov 8  }
  0x63   : > { %461 = dma.vmem_to_hbm [thread:$0]  (%p749_p9), %s838_s29, 768, %s836_s8, %s302_s15, %s681_s19, %s681_s19, %s682_s21  }
  0x64 PF: > { %s332_s28 = sand.u32 1, %s653_s9   ;;  %p471_p5 = pnand %p438_p12, %p756_p11 }
  0x65   : > { %s333_s3 = scalar_lea.sflag [#allocation4], %s332_s28 }
  0x66   : > { %p472_p6 = pneg %p471_p5 }
  0x68   : > { %648 = dma.done.wait (%p472_p6), %s333_s3, 768  }
  0x69   : > { %650 = vsyncadd (%p472_p6), %s333_s3, 4294966528  ;;  %s21_s14 = sadd.s32 1, %s673_s14   ;;  %s895_s9 = smov %s657_s10 }
  0x6a   : > { %p18_p4 = scmp.ge.s32.totalorder %s21_s14, 4   ;;  %s896_s10 = smov %s661_s11 }
  0x6b   : > { %s897_s11 = smov %s754_s23  ;;  %s898_s12 = smov %s669_s13 }
  0x6c   : > { %s899_s13 = smov %s901_s17  ;;  %20 = sbr.rel (!%p18_p4) target bundleno = 8 (0x8), region = 90 }
  0x71   :  { %338 = vsyncpa [#allocation3], 1 }
  0x72   :  { %340 = vsyncpa [#allocation3 + $0x1], 1 }
  0x73   :  { %341 = vsyncpa [#allocation6], 1 }
  0x74   :  { %343 = vsyncpa [#allocation6 + $0x1], 1 }
  0x75   :  { %344 = vsyncpa [#allocation4], 1 }
  0x76   :  { %346 = vsyncpa [#allocation4 + $0x1], 1 }

</bundles_post_ra>
